<compile_context>
chip_gen: v7x
topology: tpu7x:2x2x1
jax: 0.10.0
libtpu: 0.0.40
codegen_flags: <defaults>
</compile_context>

<pallas_src>
import jax
import jax.numpy as jnp
from jax.experimental import pallas as pl
from jax.experimental.pallas import tpu as pltpu


def mlp_kernel(p_ref, x_ref, o_ref):
    # p_ref: (16, 128) packed params slab (resident across grid steps)
    #   [0:4 , 0:8 ] = W1 (4,8)   [8:12 , 0:1] = b1 (4,1)
    #   [4:6 , 0:4 ] = W2 (2,4)   [12:14, 0:1] = b2 (2,1)
    #   [6:7 , 0:2 ] = W3 (1,2)   [14:15, 0:1] = b3 (1,1)
    # x_ref: (8, TB)   -- in_features on sublanes, batch tile on lanes
    # o_ref: (1, TB)   -- lane-dense output store
    x = x_ref[...]

    w1 = p_ref[0:4, 0:8]
    w2 = p_ref[4:6, 0:4]
    w3 = p_ref[6:7, 0:2]
    b1 = p_ref[8:12, 0:1]
    b2 = p_ref[12:14, 0:1]
    b3 = p_ref[14:15, 0:1]

    # layer 1: (4,8) @ (8,TB) + (4,1) -> relu
    h1 = jnp.maximum(
        jnp.dot(w1, x, preferred_element_type=jnp.float32) + b1, 0.0)
    # layer 2: (2,4) @ (4,TB) + (2,1) -> relu
    h2 = jnp.maximum(
        jnp.dot(w2, h1, preferred_element_type=jnp.float32) + b2, 0.0)
    # layer 3: (1,2) @ (2,TB) + (1,1) -> relu
    h3 = jnp.maximum(
        jnp.dot(w3, h2, preferred_element_type=jnp.float32) + b3, 0.0)

    o_ref[...] = h3.astype(o_ref.dtype)


def pack_params(params):
    """Pack (W1,b1,W2,b2,W3,b3) PyTorch-layout params into one (16,128) slab."""
    w1, b1, w2, b2, w3, b3 = params
    slab = jnp.zeros((16, 128), jnp.float32)
    slab = slab.at[0:4, 0:8].set(w1)
    slab = slab.at[4:6, 0:4].set(w2)
    slab = slab.at[6:7, 0:2].set(w3)
    slab = slab.at[8:12, 0:1].set(b1[:, None])
    slab = slab.at[12:14, 0:1].set(b2[:, None])
    slab = slab.at[14:15, 0:1].set(b3[:, None])
    return slab


def mlp_forward(x, slab):
    """x: (B, 8) f32 (PyTorch convention). Returns (B, 1) f32."""
    B = x.shape[0]
    # Batch tile: lane axis wants multiples of 128; use bigger tiles for real batches.
    tb = 128 if B <= 128 else 512
    n_tiles = pl.cdiv(B, tb)
    Bp = n_tiles * tb

    # Layout plumbing in the wrapper: batch goes on the lane axis.
    xT = jnp.zeros((8, Bp), jnp.float32).at[:, :B].set(x.T)

    out = pl.pallas_call(
        mlp_kernel,
        out_shape=jax.ShapeDtypeStruct((1, Bp), jnp.float32),
        grid=(n_tiles,),
        in_specs=[
            pl.BlockSpec((16, 128), lambda i: (0, 0)),  # params: resident, 1 DMA
            pl.BlockSpec((8, tb), lambda i: (0, i)),    # batch tile
        ],
        out_specs=pl.BlockSpec((1, tb), lambda i: (0, i)),
        compiler_params=pltpu.CompilerParams(
            dimension_semantics=("parallel",),          # v7x: shard batch over 2 TCs
        ),
    )(slab, xT)

    # (1, Bp) -> (B, 1): slice off padding; reshape is free (leading dim is 1).
    return out[:, :B].reshape(B, 1)


def init_params(key):
    # Mimics torch.nn.Linear default init: U(-1/sqrt(fan_in), +1/sqrt(fan_in)).
    def linear(k, out_f, in_f):
        kw, kb = jax.random.split(k)
        bound = 1.0 / jnp.sqrt(in_f)
        w = jax.random.uniform(kw, (out_f, in_f), jnp.float32, -bound, bound)
        b = jax.random.uniform(kb, (out_f,), jnp.float32, -bound, bound)
        return w, b

    k1, k2, k3 = jax.random.split(key, 3)
    w1, b1 = linear(k1, 4, 8)
    w2, b2 = linear(k2, 2, 4)
    w3, b3 = linear(k3, 1, 2)
    return (w1, b1, w2, b2, w3, b3)


def reference_forward(x, params):
    w1, b1, w2, b2, w3, b3 = params
    h = jnp.maximum(x @ w1.T + b1, 0.0)
    h = jnp.maximum(h @ w2.T + b2, 0.0)
    h = jnp.maximum(h @ w3.T + b3, 0.0)
    return h


if __name__ == "__main__":
    key = jax.random.PRNGKey(0)
    kx, kp = jax.random.split(key)

    B = 8  # small demo batch (kernel also handles large B via batch-tiled grid)
    x = jax.random.normal(kx, (B, 8), jnp.float32)
    params = init_params(kp)
    slab = pack_params(params)

    out = mlp_forward(x, slab)
    out = jax.block_until_ready(out)

    ref = reference_forward(x, params)
    assert out.shape == (B, 1), out.shape
    assert jnp.allclose(out, ref, atol=1e-5, rtol=1e-5), (out, ref)

    print("KERNEL_OK")
</pallas_src>

<mosaic_0001>
module attributes {stable_mosaic.version = 11 : i64} {
  func.func @mlp_kernel(%arg0: i32, %arg1: memref<16x128xf32, #tpu.memory_space<vmem>>, %arg2: memref<8x128xf32, #tpu.memory_space<vmem>>, %arg3: memref<1x128xf32, #tpu.memory_space<vmem>>) attributes {dimension_semantics = [#tpu.dimension_semantics<parallel>], iteration_bounds = array<i64: 1>, scalar_prefetch = 0 : i64, scratch_operands = 0 : i64, tpu.core_type = #tpu.core_type<tc>, window_params = [{pipeline_mode = #tpu.pipeline_mode<synchronous>, transform_indices = @transform_0, window_bounds = array<i64: 16, 128>}, {transform_indices = @transform_1, window_bounds = array<i64: 8, 128>}, {transform_indices = @transform_2, window_bounds = array<i64: 1, 128>}]} {
    %c0 = arith.constant 0 : index
    %c0_0 = arith.constant 0 : index
    %0 = vector.load %arg2[%c0, %c0_0] : memref<8x128xf32, #tpu.memory_space<vmem>>, vector<8x128xf32>
    %c0_1 = arith.constant 0 : index
    %c0_2 = arith.constant 0 : index
    %1 = vector.load %arg1[%c0_1, %c0_2] : memref<16x128xf32, #tpu.memory_space<vmem>>, vector<4x8xf32>
    %c4 = arith.constant 4 : index
    %c0_3 = arith.constant 0 : index
    %2 = vector.load %arg1[%c4, %c0_3] : memref<16x128xf32, #tpu.memory_space<vmem>>, vector<2x4xf32>
    %c6 = arith.constant 6 : index
    %c0_4 = arith.constant 0 : index
    %3 = vector.load %arg1[%c6, %c0_4] : memref<16x128xf32, #tpu.memory_space<vmem>>, vector<1x2xf32>
    %c8 = arith.constant 8 : index
    %c0_5 = arith.constant 0 : index
    %4 = vector.load %arg1[%c8, %c0_5] : memref<16x128xf32, #tpu.memory_space<vmem>>, vector<4x1xf32>
    %c12 = arith.constant 12 : index
    %c0_6 = arith.constant 0 : index
    %5 = vector.load %arg1[%c12, %c0_6] : memref<16x128xf32, #tpu.memory_space<vmem>>, vector<2x1xf32>
    %c14 = arith.constant 14 : index
    %c0_7 = arith.constant 0 : index
    %6 = vector.load %arg1[%c14, %c0_7] : memref<16x128xf32, #tpu.memory_space<vmem>>, vector<1x1xf32>
    %cst = arith.constant dense<0.000000e+00> : vector<4x128xf32>
    %7 = tpu.matmul %1, %0, %cst {dimension_numbers = #tpu.dot_dimension_numbers<[1], [0], [0], [1], [0, 0, 1, 1], [], []>} : vector<4x8xf32>, vector<8x128xf32>, vector<4x128xf32> -> vector<4x128xf32>
    %8 = vector.broadcast %4 : vector<4x1xf32> to vector<4x128xf32>
    %9 = arith.addf %7, %8 : vector<4x128xf32>
    %cst_8 = arith.constant 0.000000e+00 : f32
    %10 = vector.broadcast %cst_8 : f32 to vector<4x128xf32>
    %11 = arith.maximumf %9, %10 : vector<4x128xf32>
    %cst_9 = arith.constant dense<0.000000e+00> : vector<2x128xf32>
    %12 = tpu.matmul %2, %11, %cst_9 {dimension_numbers = #tpu.dot_dimension_numbers<[1], [0], [0], [1], [0, 0, 1, 1], [], []>} : vector<2x4xf32>, vector<4x128xf32>, vector<2x128xf32> -> vector<2x128xf32>
    %13 = vector.broadcast %5 : vector<2x1xf32> to vector<2x128xf32>
    %14 = arith.addf %12, %13 : vector<2x128xf32>
    %cst_10 = arith.constant 0.000000e+00 : f32
    %15 = vector.broadcast %cst_10 : f32 to vector<2x128xf32>
    %16 = arith.maximumf %14, %15 : vector<2x128xf32>
    %cst_11 = arith.constant dense<0.000000e+00> : vector<1x128xf32>
    %17 = tpu.matmul %3, %16, %cst_11 {dimension_numbers = #tpu.dot_dimension_numbers<[1], [0], [0], [1], [0, 0, 1, 1], [], []>} : vector<1x2xf32>, vector<2x128xf32>, vector<1x128xf32> -> vector<1x128xf32>
    %18 = vector.broadcast %6 : vector<1x1xf32> to vector<1x128xf32>
    %19 = arith.addf %17, %18 : vector<1x128xf32>
    %cst_12 = arith.constant 0.000000e+00 : f32
    %20 = vector.broadcast %cst_12 : f32 to vector<1x128xf32>
    %21 = arith.maximumf %19, %20 : vector<1x128xf32>
    %c0_13 = arith.constant 0 : index
    %c0_14 = arith.constant 0 : index
    %22 = vector.load %arg3[%c0_13, %c0_14] : memref<1x128xf32, #tpu.memory_space<vmem>>, vector<1x128xf32>
    tpu.vector_store %arg3[%c0_13, %c0_14], %21 {strides = array<i32>} : memref<1x128xf32, #tpu.memory_space<vmem>>, vector<1x128xf32>,
    return
  }
  func.func @transform_0(%arg0: i32) -> (i32, i32) {
    %c0_i32 = arith.constant 0 : i32
    %c0_i32_0 = arith.constant 0 : i32
    %c0_i32_1 = arith.constant 0 : i32
    return %c0_i32, %c0_i32_0 : i32, i32
  }
  func.func @transform_1(%arg0: i32) -> (i32, i32) {
    %c0_i32 = arith.constant 0 : i32
    %c0_i32_0 = arith.constant 0 : i32
    return %c0_i32, %arg0 : i32, i32
  }
  func.func @transform_2(%arg0: i32) -> (i32, i32) {
    %c0_i32 = arith.constant 0 : i32
    %c0_i32_0 = arith.constant 0 : i32
    return %c0_i32, %arg0 : i32, i32
  }
}

</mosaic_0001>

<bundles_post_ra>
// kernel: tpu_custom_call.1
= control target key start
LH: loop header
LB: loop body
LE: loop exit
PB: predicated region body
PF: predicated region fallthrough
CT: control target
= control target key end

     0   :  { %7 = vsyncpa [#allocation3], 0  ;;  %s480_s0 = inlined_call_operand.hbm [shape: f32[16,128], index: 0, kind: input, shape index: {}]   ;;  %s481_s1 = inlined_call_operand.hbm [shape: f32[8,128], index: 1, kind: input, shape index: {}]   ;;  %s482_s2 = inlined_call_operand.hbm [shape: f32[1,128], index: 2, kind: output, shape index: {}]  }
   0x1   :  { %8 = vsyncpa [#allocation6], 0 }
   0x2   :  { %9 = vsyncpa [#allocation4], 0  ;;  %s418_s9 = smov [#allocation2]   ;;  %s346_s13 = scalar_lea.hbm %s480_s0, 256 }
   0x3   :  { %s15_s10 = sshll.u32 %s418_s9, 4  ;;  %p347_p0 = scmp.ne.s32.totalorder %s480_s0, %s346_s13  ;;  %s16_s10 = int_to_ptr.vmem [resolvable:$true] %s15_s10 }
   0x4   :  { %p350_p1 = scmp.lt.u32.totalorder %s346_s13, %s480_s0 }
   0x6   :  { %p352_p2 = pnand %p350_p1, %p347_p0 }
   0x8   :  { %355 = shalt.err (!%p352_p2)
}
   0x9   :  { %s356_s18 = scalar_lea.vmem %s16_s10, 256  ;;  %p361_p4 = scmp.lt.s32.totalorder %s16_s10, %s16_s10 }
   0xa   :  { %p357_p3 = scmp.ne.s32.totalorder %s16_s10, %s356_s18  ;;  %p362_p5 = scmp.lt.s32.totalorder %s356_s18, %s356_s18 }
   0xc   :  { %p363_p6 = por %p362_p5, %p361_p4 }
   0xe   :  { %p364_p7 = pnand %p363_p6, %p357_p3 }
  0x10   :  { %367 = shalt.err (!%p364_p7)
}
  0x11   :  { %s419_s19 = smov 128   ;;  %s420_s20 = smov 8  }
  0x12   :  { %21 = dma.hbm_to_vmem [thread:$0]  %s480_s0, 256, %s16_s10, [#allocation3], %s419_s19, %s419_s19, %s420_s20  }
  0x13   :  { %s421_s23 = smov [#allocation5]   ;;  %s368_s27 = scalar_lea.hbm %s481_s1, 128 }
  0x14   :  { %s28_s24 = sshll.u32 %s421_s23, 4  ;;  %p369_p8 = scmp.ne.s32.totalorder %s481_s1, %s368_s27  ;;  %s29_s24 = int_to_ptr.vmem [resolvable:$true] %s28_s24 }
  0x15   :  { %p372_p9 = scmp.lt.u32.totalorder %s368_s27, %s481_s1 }
  0x17   :  { %p374_p10 = pnand %p372_p9, %p369_p8 }
  0x19   :  { %377 = shalt.err (!%p374_p10)
}
  0x1a   :  { %s378_s4 = scalar_lea.vmem %s29_s24, 128  ;;  %p383_p12 = scmp.lt.s32.totalorder %s29_s24, %s29_s24 }
  0x1b   :  { %p379_p11 = scmp.ne.s32.totalorder %s29_s24, %s378_s4  ;;  %p384_p13 = scmp.lt.s32.totalorder %s378_s4, %s378_s4 }
  0x1d   :  { %p385_p0 = por %p384_p13, %p383_p12 }
  0x1f   :  { %p386_p1 = pnand %p385_p0, %p379_p11 }
  0x21   :  { %389 = shalt.err (!%p386_p1)
}
  0x22   :  { %31 = dma.hbm_to_vmem [thread:$0]  %s481_s1, 128, %s29_s24, [#allocation6]  }
  0x23   :  { %412 = dma.done.wait [#allocation3], 256  }
  0x24   :  { %413 = vsyncadd [#allocation3], 4294967040 }
  0x25   :  { %414 = dma.done.wait [#allocation6], 128  }
  0x26   :  { %415 = vsyncadd [#allocation6], 4294967168  ;;  %v422_v0 = vmov 0.0   ;;  %vm423_vm0 = vmmov 0   ;;  %v424_v1 = vmov 0   ;;  %vm50_vm1 = vcmask 64512  }
  0x27   :  { %321 = vmatprep.subr.mxu0 %v422_v0  ;;  %323 = vmatprep.mubr.msk.f32.mxu0 %vm423_vm0, %v422_v0  ;;  %v38_v2 = vld [vmem:[#allocation5] sm:$0xff]  ;;  %v39_v3 = vld [vmem:[#allocation2] sm:$0xf]  ;;  %v42_v4 = vld [vmem:[#allocation2 + $0x8] sm:$0xf]  ;;  %vm134_vm2 = vcmask 1043456  }
  0x28   :  { %344 = vset.pattern.permute.xlu0 %v424_v1  ;;  %326 = vmatprep.subr.mxu1 %v422_v0  ;;  %v43_v5 = vld [vmem:[#allocation2 + $0xc] sm:$0x3]  ;;  %v40_v11 = vld [vmem:[#allocation2 + $0x4] sm:$0x3]  ;;  %vm130_vm3 = vcmask 31744   ;;  %vm218_vm4 = vcmask 1041408  }
  0x29   :  { %328 = vmatprep.mubr.msk.f32.mxu1 %vm423_vm0, %v422_v0  ;;  %345 = vset.pattern.permute.xlu1 %v424_v1  ;;  %v44_v12 = vld [vmem:[#allocation2 + $0xe] sm:$0x1]  ;;  %v41_v18 = vld [vmem:[#allocation2 + $0x6] sm:$0x1]  ;;  %vm214_vm5 = vcmask 15360   ;;  %s425_s1 = smov [#allocation7]  }
  0x2a   :  { %322 = vmatpush3.msra.mxu0 %v38_v2  ;;  %47 = vperm.xlu0 %344, %v42_v4   ;;  %s300_s6 = sshll.u32 %s425_s1, 4  ;;  %s301_s6 = int_to_ptr.vmem [resolvable:$true] %s300_s6 }
  0x2b   :  { %324 = vmatmul.mubr.msk.f32.vlgmr.msra.gmra.mrb[0].mxu0 %vm50_vm1, %v39_v3  ;;  %331 = vmatprep.subr.mxu0 %v422_v0  ;;  %s390_s7 = scalar_lea.vmem %s301_s6, 16  ;;  %s394_s8 = scalar_lea.vmem %s301_s6, 32 }
  0x2c   :  { %333 = vmatprep.mubr.msk.f32.mxu0 %vm423_vm0, %v422_v0  ;;  %211 = vperm.xlu1 %345, %v44_v12   ;;  %p391_p2 = scmp.ne.s32.totalorder %s301_s6, %s390_s7  ;;  %p395_p3 = scmp.lt.s32.totalorder %s301_s6, %s301_s6 }
  0x2d   :  { %p396_p4 = scmp.lt.s32.totalorder %s394_s8, %s390_s7 }
  0x2e   :  { %127 = vperm.xlu0 %344, %v43_v5  }
  0x2f   :  { %p397_p5 = por %p396_p4, %p395_p3 }
  0x31   :  { %p398_p6 = pnand %p397_p5, %p391_p2 }
  0xa9   :  { %v48_v6 = vpop.permute.xlu0 %47 }
  0xab   :  { %v212_v19 = vpop.permute.xlu1 %211 }
  0xad   :  { %v128_v13 = vpop.permute.xlu0 %127 }
  0xfe   :  { %v120_v7 = vpop.f32.mrb[0].mxu0 }
  0xff   :  { %v121_v8 = vadd.f32 %v120_v7, %v48_v6  ;;  %v325_v9 = vpop.f32.mrb[1].mxu0 }
 0x101   :  { %v124_v10 = vmax.f32 %v121_v8, 0.0 }
 0x103   :  { %327 = vmatpush3.msk.msra.mxu1 %vm134_vm2, %v124_v10 }
 0x104   :  { %329 = vmatmul.mubr.msk.f32.vlgmr.msra.gmra.mrb[0].mxu1 %vm130_vm3, %v40_v11 }
 0x1d7   :  { %v204_v14 = vpop.f32.mrb[0].mxu1 }
 0x1d8   :  { %v205_v15 = vadd.f32 %v204_v14, %v128_v13  ;;  %v330_v16 = vpop.f32.mrb[1].mxu1 }
 0x1da   :  { %v208_v17 = vmax.f32 %v205_v15, 0.0 }
 0x1dc   :  { %332 = vmatpush3.msk.msra.mxu0 %vm218_vm4, %v208_v17 }
 0x1dd   :  { %334 = vmatmul.mubr.msk.f32.vlgmr.msra.gmra.mrb[2].mxu0 %vm214_vm5, %v41_v18 }
 0x2b0   :  { %v288_v20 = vpop.f32.mrb[2].mxu0 }
 0x2b1   :  { %v289_v21 = vadd.f32 %v288_v20, %v212_v19  ;;  %v335_v22 = vpop.f32.mrb[3].mxu0 }
 0x2b3   :  { %v292_v23 = vmax.f32 %v289_v21, 0.0 }
 0x2b5   :  { %293 = vst [vmem:[#allocation7] sm:$0x1] %v292_v23 }
 0x2b6   :  { %401 = shalt.err (!%p398_p6)
}
 0x2b7   :  { %s402_s11 = scalar_lea.hbm %s482_s2, 16 }
 0x2b8   :  { %p403_p7 = scmp.ne.s32.totalorder %s482_s2, %s402_s11  ;;  %p406_p8 = scmp.lt.u32.totalorder %s402_s11, %s482_s2 }
 0x2ba   :  { %p408_p9 = pnand %p406_p8, %p403_p7 }
 0x2bc   :  { %411 = shalt.err (!%p408_p9)
}
 0x2bd   :  { %303 = dma.vmem_to_hbm [thread:$0]  %s301_s6, 16, %s482_s2, [#allocation4]  }
 0x2be   :  { %416 = dma.done.wait [#allocation4], 16  }
 0x2bf   :  { %417 = vsyncadd [#allocation4], 4294967280 }
 0x2c0   :  { %307 = vsyncpa [#allocation3], 1 }
 0x2c1   :  { %308 = vsyncpa [#allocation6], 1 }
 0x2c2   :  { %309 = vsyncpa [#allocation4], 1 }

</bundles_post_ra>
